<compile_context>
chip_gen: v7x
topology: tpu7x:2x2x1
jax: 0.10.0
libtpu: 0.0.40
codegen_flags: <defaults>
</compile_context>

<pallas_src>
import jax
import jax.numpy as jnp
from jax.experimental import pallas as pl
from jax.experimental.pallas import tpu as pltpu

DIN = 2      # fc1 input features
HID = 50     # fc1 output / fc2 input features
DOUT = 1     # fc2 output features
HP = 56      # hidden dim padded to a multiple of 8 sublanes (padding done once)


def _round_up(n, m):
    return ((n + m - 1) // m) * m


def _mlp_kernel(xT_ref, w1_ref, b1_ref, w2_ref, b2_ref, o_ref):
    xT = xT_ref[...]                      # (2, TB)   f32, batch on lanes
    w1 = w1_ref[...]                      # (HP, 2)   f32 (padded rows are 0)
    # fc1 (Din == 2) as two rank-1 broadcast multiplies + bias -> pure VPU.
    h = (w1[:, 0:1] * xT[0:1, :]
         + w1[:, 1:2] * xT[1:2, :]
         + b1_ref[...])                   # (HP, TB)
    h = jnp.maximum(h, 0.0)
    # fc2 (Dout == 1): weighted sublane reduce -> lane-dense (1, TB) output.
    z = jnp.sum(h * w2_ref[...], axis=0, keepdims=True) + b2_ref[0, 0]
    o_ref[...] = jax.nn.sigmoid(z)        # (1, TB) unmasked, 128-lane dense


def prepare_params(params):
    """One-time padding / layout prep (hoisted out of the forward pass)."""
    f32 = jnp.float32
    w1 = params["fc1_w"].astype(f32)      # (50, 2)  torch layout (out, in)
    b1 = params["fc1_b"].astype(f32)      # (50,)
    w2 = params["fc2_w"].astype(f32)      # (1, 50)
    b2 = params["fc2_b"].astype(f32)      # (1,)
    w1_p = jnp.zeros((HP, DIN), f32).at[:HID, :].set(w1)      # (56, 2)
    b1_p = jnp.zeros((HP, 1), f32).at[:HID, 0].set(b1)        # (56, 1)
    w2_p = jnp.zeros((HP, 1), f32).at[:HID, 0].set(w2[0])     # (56, 1)
    b2_p = b2.reshape(1, 1)                                   # (1, 1) -> SMEM
    return {"w1": w1_p, "b1": b1_p, "w2": w2_p, "b2": b2_p,
            # originals kept for the small-batch XLA fast path
            "fc1_w": w1, "fc1_b": b1, "fc2_w": w2, "fc2_b": b2}


def _xla_forward(x, prepped):
    h = jnp.maximum(x @ prepped["fc1_w"].T + prepped["fc1_b"], 0.0)
    return jax.nn.sigmoid(h @ prepped["fc2_w"].T + prepped["fc2_b"])


def binary_classifier_forward(x, prepped, *, tile_b=8192,
                              min_kernel_batch=4096, force_kernel=False):
    """x: (B, 2); prepped: output of prepare_params. Returns (B, 1) f32."""
    assert x.shape[1] == DIN, x.shape
    B = x.shape[0]
    x = x.astype(jnp.float32)

    # Small-batch fast path: fixed launch + DMA setup cost beats the whole
    # computation below a few thousand rows.
    if not force_kernel and B < min_kernel_batch:
        return _xla_forward(x, prepped)

    # Batch tile: always a multiple of 128 lanes (lane-dense loads & stores).
    TB = max(128, min(_round_up(tile_b, 128), _round_up(max(B, 1), 128)))
    Bp = _round_up(max(B, 1), TB)

    # Transposed, padded input slab (2, Bp): batch on lanes.
    xT = jnp.zeros((DIN, Bp), jnp.float32).at[:, :B].set(x.T)

    grid = (Bp // TB,)
    cost = pl.CostEstimate(
        flops=2 * B * (DIN * HID + HID * DOUT),
        transcendentals=B,  # sigmoid
        bytes_accessed=(Bp * DIN + Bp * DOUT + HP * (DIN + 2) + 1) * 4,
    )

    out_p = pl.pallas_call(
        _mlp_kernel,
        out_shape=jax.ShapeDtypeStruct((DOUT, Bp), jnp.float32),
        grid=grid,
        in_specs=[
            pl.BlockSpec((DIN, TB), lambda i: (0, i)),          # x.T: batch-tiled
            pl.BlockSpec((HP, DIN), lambda i: (0, 0)),          # w1: resident
            pl.BlockSpec((HP, 1), lambda i: (0, 0)),            # b1: resident
            pl.BlockSpec((HP, 1), lambda i: (0, 0)),            # w2: resident
            pl.BlockSpec(memory_space=pltpu.MemorySpace.SMEM),  # b2: scalar
        ],
        out_specs=pl.BlockSpec((DOUT, TB), lambda i: (0, i)),   # lane-dense slab
        compiler_params=pltpu.CompilerParams(
            dimension_semantics=("parallel",),
            vmem_limit_bytes=32 << 20,   # safe on v5e/v6e/v7x; covers TB<=8192
        ),
        cost_estimate=cost,
    )(xT, prepped["w1"], prepped["b1"], prepped["w2"], prepped["b2"])

    return out_p[:, :B].T                                       # (B, 1)


def init_params(key):
    """Deterministic init mirroring nn.Linear default (U[-1/sqrt(fan_in), +])."""
    k1, k2, k3, k4 = jax.random.split(key, 4)
    bound1 = 1.0 / jnp.sqrt(2.0)
    bound2 = 1.0 / jnp.sqrt(50.0)
    return {
        "fc1_w": jax.random.uniform(k1, (HID, DIN), jnp.float32, -bound1, bound1),
        "fc1_b": jax.random.uniform(k2, (HID,), jnp.float32, -bound1, bound1),
        "fc2_w": jax.random.uniform(k3, (DOUT, HID), jnp.float32, -bound2, bound2),
        "fc2_b": jax.random.uniform(k4, (DOUT,), jnp.float32, -bound2, bound2),
    }


def reference_forward(x, params):
    h = jnp.maximum(x.astype(jnp.float32) @ params["fc1_w"].T + params["fc1_b"], 0.0)
    z = h @ params["fc2_w"].T + params["fc2_b"]
    return jax.nn.sigmoid(z)


if __name__ == "__main__":
    key = jax.random.PRNGKey(0)
    pkey, xkey1, xkey2 = jax.random.split(key, 3)
    params = init_params(pkey)
    prepped = prepare_params(params)   # padded / transposed weights cached once

    # Small batch (as implied by nn.Linear(2, 50)); force the Pallas path.
    x = jax.random.normal(xkey1, (2, DIN), dtype=jnp.float32)
    y = jax.block_until_ready(binary_classifier_forward(x, prepped, force_kernel=True))
    y_ref = reference_forward(x, params)
    assert y.shape == (2, 1), y.shape
    assert jnp.allclose(y, y_ref, atol=1e-5, rtol=1e-5), (y, y_ref)

    # Multi-tile path: batch padding + several grid steps (TB rounds to 512).
    x2 = jax.random.normal(xkey2, (1030, DIN), dtype=jnp.float32)
    y2 = jax.block_until_ready(
        binary_classifier_forward(x2, prepped, tile_b=512, force_kernel=True))
    y2_ref = reference_forward(x2, params)
    assert y2.shape == (1030, 1), y2.shape
    assert jnp.allclose(y2, y2_ref, atol=1e-5, rtol=1e-5)

    # Small-batch fast path (plain XLA) still matches.
    y3 = jax.block_until_ready(binary_classifier_forward(x, prepped))
    assert jnp.allclose(y3, y_ref, atol=1e-5, rtol=1e-5)

    print("KERNEL_OK")
</pallas_src>

<mosaic_0001>
module attributes {stable_mosaic.version = 11 : i64} {
  func.func @_mlp_kernel(%arg0: i32, %arg1: memref<2x128xf32, #tpu.memory_space<vmem>>, %arg2: memref<56x2xf32, #tpu.memory_space<vmem>>, %arg3: memref<56x1xf32, #tpu.memory_space<vmem>>, %arg4: memref<56x1xf32, #tpu.memory_space<vmem>>, %arg5: memref<1x1xf32, #tpu.memory_space<smem>>, %arg6: memref<1x128xf32, #tpu.memory_space<vmem>>) attributes {dimension_semantics = [#tpu.dimension_semantics<parallel>], iteration_bounds = array<i64: 1>, scalar_prefetch = 0 : i64, scratch_operands = 0 : i64, tpu.core_type = #tpu.core_type<tc>, window_params = [{transform_indices = @transform_0, window_bounds = array<i64: 2, 128>}, {pipeline_mode = #tpu.pipeline_mode<synchronous>, transform_indices = @transform_1, window_bounds = array<i64: 56, 2>}, {pipeline_mode = #tpu.pipeline_mode<synchronous>, transform_indices = @transform_2, window_bounds = array<i64: 56, 1>}, {pipeline_mode = #tpu.pipeline_mode<synchronous>, transform_indices = @transform_3, window_bounds = array<i64: 56, 1>}, {transform_indices = @transform_4, window_bounds = array<i64: 1, 1>}, {transform_indices = @transform_5, window_bounds = array<i64: 1, 128>}]} {
    %c0 = arith.constant 0 : index
    %c0_0 = arith.constant 0 : index
    %0 = vector.load %arg1[%c0, %c0_0] : memref<2x128xf32, #tpu.memory_space<vmem>>, vector<2x128xf32>
    %c0_1 = arith.constant 0 : index
    %c0_2 = arith.constant 0 : index
    %1 = vector.load %arg2[%c0_1, %c0_2] : memref<56x2xf32, #tpu.memory_space<vmem>>, vector<56x2xf32>
    %2 = vector.extract_strided_slice %1 {offsets = [0, 0], sizes = [56, 1], strides = [1, 1]} : vector<56x2xf32> to vector<56x1xf32>
    %3 = vector.extract_strided_slice %0 {offsets = [0, 0], sizes = [1, 128], strides = [1, 1]} : vector<2x128xf32> to vector<1x128xf32>
    %4 = vector.broadcast %2 : vector<56x1xf32> to vector<56x128xf32>
    %5 = vector.broadcast %3 : vector<1x128xf32> to vector<56x128xf32>
    %6 = arith.mulf %4, %5 : vector<56x128xf32>
    %7 = vector.extract_strided_slice %1 {offsets = [0, 1], sizes = [56, 1], strides = [1, 1]} : vector<56x2xf32> to vector<56x1xf32>
    %8 = vector.extract_strided_slice %0 {offsets = [1, 0], sizes = [1, 128], strides = [1, 1]} : vector<2x128xf32> to vector<1x128xf32>
    %9 = vector.broadcast %7 : vector<56x1xf32> to vector<56x128xf32>
    %10 = vector.broadcast %8 : vector<1x128xf32> to vector<56x128xf32>
    %11 = arith.mulf %9, %10 : vector<56x128xf32>
    %12 = arith.addf %6, %11 : vector<56x128xf32>
    %c0_3 = arith.constant 0 : index
    %c0_4 = arith.constant 0 : index
    %13 = vector.load %arg3[%c0_3, %c0_4] : memref<56x1xf32, #tpu.memory_space<vmem>>, vector<56x1xf32>
    %14 = vector.broadcast %13 : vector<56x1xf32> to vector<56x128xf32>
    %15 = arith.addf %12, %14 : vector<56x128xf32>
    %cst = arith.constant 0.000000e+00 : f32
    %16 = vector.broadcast %cst : f32 to vector<56x128xf32>
    %17 = arith.maximumf %15, %16 : vector<56x128xf32>
    %c0_5 = arith.constant 0 : index
    %c0_6 = arith.constant 0 : index
    %18 = vector.load %arg4[%c0_5, %c0_6] : memref<56x1xf32, #tpu.memory_space<vmem>>, vector<56x1xf32>
    %19 = vector.broadcast %18 : vector<56x1xf32> to vector<56x128xf32>
    %20 = arith.mulf %17, %19 : vector<56x128xf32>
    %cst_7 = arith.constant dense<0.000000e+00> : vector<128xf32>
    %21 = vector.multi_reduction <add>, %20, %cst_7 [0] : vector<56x128xf32> to vector<128xf32>
    %22 = vector.shape_cast %21 : vector<128xf32> to vector<1x128xf32>
    %c0_8 = arith.constant 0 : index
    %c0_9 = arith.constant 0 : index
    %23 = memref.load %arg5[%c0_8, %c0_9] : memref<1x1xf32, #tpu.memory_space<smem>>
    %24 = vector.broadcast %23 : f32 to vector<1x128xf32>
    %25 = arith.addf %22, %24 : vector<1x128xf32>
    %26 = arith.negf %25 : vector<1x128xf32>
    %27 = math.exp %26 : vector<1x128xf32>
    %cst_10 = arith.constant 1.000000e+00 : f32
    %28 = vector.broadcast %cst_10 : f32 to vector<1x128xf32>
    %29 = arith.addf %28, %27 : vector<1x128xf32>
    %30 = arith.divf %28, %29 : vector<1x128xf32>
    %c0_11 = arith.constant 0 : index
    %c0_12 = arith.constant 0 : index
    %31 = vector.load %arg6[%c0_11, %c0_12] : memref<1x128xf32, #tpu.memory_space<vmem>>, vector<1x128xf32>
    tpu.vector_store %arg6[%c0_11, %c0_12], %30 {strides = array<i32>} : memref<1x128xf32, #tpu.memory_space<vmem>>, vector<1x128xf32>,
    return
  }
  func.func @transform_0(%arg0: i32) -> (i32, i32) {
    %c0_i32 = arith.constant 0 : i32
    %c0_i32_0 = arith.constant 0 : i32
    return %c0_i32, %arg0 : i32, i32
  }
  func.func @transform_1(%arg0: i32) -> (i32, i32) {
    %c0_i32 = arith.constant 0 : i32
    %c0_i32_0 = arith.constant 0 : i32
    %c0_i32_1 = arith.constant 0 : i32
    return %c0_i32, %c0_i32_0 : i32, i32
  }
  func.func @transform_2(%arg0: i32) -> (i32, i32) {
    %c0_i32 = arith.constant 0 : i32
    %c0_i32_0 = arith.constant 0 : i32
    %c0_i32_1 = arith.constant 0 : i32
    return %c0_i32, %c0_i32_0 : i32, i32
  }
  func.func @transform_3(%arg0: i32) -> (i32, i32) {
    %c0_i32 = arith.constant 0 : i32
    %c0_i32_0 = arith.constant 0 : i32
    %c0_i32_1 = arith.constant 0 : i32
    return %c0_i32, %c0_i32_0 : i32, i32
  }
  func.func @transform_4(%arg0: i32) -> (i32, i32) {
    %c0_i32 = arith.constant 0 : i32
    %c0_i32_0 = arith.constant 0 : i32
    %c0_i32_1 = arith.constant 0 : i32
    return %c0_i32, %c0_i32_0 : i32, i32
  }
  func.func @transform_5(%arg0: i32) -> (i32, i32) {
    %c0_i32 = arith.constant 0 : i32
    %c0_i32_0 = arith.constant 0 : i32
    return %c0_i32, %arg0 : i32, i32
  }
}

</mosaic_0001>

<bundles_post_ra>
// kernel: tpu_custom_call.1
= control target key start
LH: loop header
LB: loop body
LE: loop exit
PB: predicated region body
PF: predicated region fallthrough
CT: control target
= control target key end

     0   :  { %v303_v2 = vmov 1   ;;  %v304_v4 = vmov 0   ;;  %s417_s0 = inlined_call_operand.vmem [shape: f32[2,128], index: 0, kind: input, shape index: {}]   ;;  %s418_s1 = inlined_call_operand.vmem [shape: f32[56,2], index: 1, kind: input, shape index: {}]   ;;  %s419_s2 = inlined_call_operand.vmem [shape: f32[56,1], index: 2, kind: input, shape index: {}]   ;;  %s420_s3 = inlined_call_operand.vmem [shape: f32[56,1], index: 3, kind: input, shape index: {}]   ;;  %s421_s4 = inlined_call_operand.<no memory space> [shape: f32[1,1], index: 4, kind: input, shape index: {}]   ;;  %s422_s5 = inlined_call_operand.hbm [shape: f32[1,128], index: 5, kind: output, shape index: {}]  }
   0x1   :  { %v28_v0 = vld [vmem:[%s418_s1 + $0x28] sm:$0xff]  ;;  %v23_v1 = vld [vmem:[%s418_s1] sm:$0xff]  ;;  %271 = vset.pattern.permute.xlu0 %v303_v2  ;;  %267 = vset.pattern.permute.xlu1 %v303_v2  ;;  %v25_v5 = vld [vmem:[%s418_s1 + $0x10] sm:$0xff] }
   0x2   :  { %97 = vperm.xlu0 %271, %v28_v0   ;;  %77 = vperm.xlu1 %267, %v23_v1   ;;  %v24_v3 = vld [vmem:[%s418_s1 + $0x8] sm:$0xff] }
   0x6   :  { %272 = vset.pattern.permute.xlu0 %v304_v4  ;;  %81 = vperm.xlu1 %267, %v24_v3  }
   0x7   :  { %32 = vperm.xlu0 %272, %v23_v1  }
   0x8   :  { %11 = vsyncpa [#allocation4], 0  ;;  %v26_v6 = vld [vmem:[%s418_s1 + $0x18] sm:$0xff]  ;;  %v123_v7 = vld [vmem:[%s419_s2 + $0x8] sm:$0xff]  ;;  %v65_v35 = vlaneseq  ;;  %s305_s10 = smov [#allocation3]  }
   0x9   :  { %v122_v8 = vld [vmem:[%s419_s2] sm:$0xff]  ;;  %v124_v10 = vld [vmem:[%s419_s2 + $0x10] sm:$0xff]  ;;  %v125_v11 = vld [vmem:[%s419_s2 + $0x18] sm:$0xff]  ;;  %s255_s11 = sshll.u32 %s305_s10, 4  ;;  %s256_s11 = int_to_ptr.vmem [resolvable:$true] %s255_s11 }
   0xa   :  { %85 = vperm.xlu1 %267, %v25_v5   ;;  %v27_v9 = vld [vmem:[%s418_s1 + $0x20] sm:$0xff]  ;;  %v179_v12 = vld [vmem:[%s420_s3 + $0x8] sm:$0xff]  ;;  %v29_v15 = vld [vmem:[%s418_s1 + $0x30] sm:$0xff]  ;;  %v66_v38 = vshrl.u32 %v65_v35, 7  ;;  %s279_s12 = scalar_lea.vmem %s256_s11, 16  ;;  %s283_s13 = scalar_lea.vmem %s256_s11, 32 }
   0xb   :  { %37 = vperm.xlu0 %272, %v24_v3   ;;  %v178_v13 = vld [vmem:[%s420_s3] sm:$0xff]  ;;  %v127_v16 = vld [vmem:[%s419_s2 + $0x28] sm:$0xff]  ;;  %v128_v17 = vld [vmem:[%s419_s2 + $0x30] sm:$0xff]  ;;  %p280_p0 = scmp.ne.s32.totalorder %s256_s11, %s279_s12  ;;  %p284_p1 = scmp.lt.s32.totalorder %s256_s11, %s256_s11 }
   0xc   :  { %v126_v14 = vld [vmem:[%s419_s2 + $0x20] sm:$0xff]  ;;  %v183_v18 = vld [vmem:[%s420_s3 + $0x28] sm:$0xff]  ;;  %v180_v19 = vld [vmem:[%s420_s3 + $0x10] sm:$0xff]  ;;  %v67_v40 = vsub.s32 0, %v66_v38  ;;  %v106_v42 = vsub.s32 1, %v66_v38  ;;  %p285_p2 = scmp.lt.s32.totalorder %s283_s13, %s279_s12 }
   0xd   :  { %v181_v20 = vld [vmem:[%s420_s3 + $0x18] sm:$0xff]  ;;  %v182_v21 = vld [vmem:[%s420_s3 + $0x20] sm:$0xff]  ;;  %v184_v22 = vld [vmem:[%s420_s3 + $0x30] sm:$0xff] }
   0xe   :  { %89 = vperm.xlu1 %267, %v26_v6   ;;  %v22_v43 = vld [vmem:[%s417_s0] sm:$0x3]  ;;  %p286_p3 = por %p285_p2, %p284_p1 }
   0xf   :  { %42 = vperm.xlu0 %272, %v25_v5   ;;  %v68_v45 = vrot.slane %v22_v43, %v67_v40  ;;  %v107_v47 = vrot.slane %v22_v43, %v106_v42 }
  0x10   :  { %p287_p4 = pnand %p286_p3, %p280_p0 }
  0x12   :  { %268 = vset.pattern.permute.xlu1 %v304_v4 }
  0x13   :  { %47 = vperm.xlu0 %272, %v26_v6   ;;  %136 = vperm.xlu1 %268, %v123_v7  }
  0x17   :  { %131 = vperm.xlu0 %272, %v122_v8   ;;  %269 = vset.pattern.permute.xlu1 %v303_v2 }
  0x18   :  { %93 = vperm.xlu1 %269, %v27_v9  }
  0x1b   :  { %52 = vperm.xlu0 %272, %v27_v9  }
  0x1c   :  { %270 = vset.pattern.permute.xlu1 %v304_v4 }
  0x1d   :  { %57 = vperm.xlu1 %270, %v28_v0  }
  0x1f   :  { %141 = vperm.xlu0 %272, %v124_v10  }
  0x21   :  { %146 = vperm.xlu1 %270, %v125_v11  }
  0x23   :  { %192 = vperm.xlu0 %272, %v179_v12  }
  0x25   :  { %187 = vperm.xlu1 %270, %v178_v13  }
  0x27   :  { %151 = vperm.xlu0 %272, %v126_v14  }
  0x29   :  { %62 = vperm.xlu1 %270, %v29_v15  }
  0x2b   :  { %156 = vperm.xlu0 %272, %v127_v16  }
  0x2d   :  { %273 = vset.pattern.permute.xlu1 %v303_v2 }
  0x2e   :  { %101 = vperm.xlu1 %273, %v29_v15  }
  0x2f   :  { %161 = vperm.xlu0 %272, %v128_v17  }
  0x32   :  { %274 = vset.pattern.permute.xlu1 %v304_v4 }
  0x33   :  { %212 = vperm.xlu0 %272, %v183_v18   ;;  %197 = vperm.xlu1 %274, %v180_v19  }
  0x37   :  { %202 = vperm.xlu1 %274, %v181_v20  }
  0x3b   :  { %207 = vperm.xlu1 %274, %v182_v21  }
  0x3f   :  { %217 = vperm.xlu1 %274, %v184_v22  }
  0x81   :  { %v78_v23 = vpop.permute.xlu1 %77  ;;  %v98_v24 = vpop.permute.xlu0 %97 }
  0x82   :  { %v108_v52 = vmul.f32 %v107_v47, %v78_v23  ;;  %v113_v9 = vmul.f32 %v107_v47, %v98_v24 }
  0x85   :  { %v82_v25 = vpop.permute.xlu1 %81 }
  0x86   :  { %v33_v26 = vpop.permute.xlu0 %32  ;;  %v109_v54 = vmul.f32 %v107_v47, %v82_v25 }
  0x87   :  { %v69_v48 = vmul.f32 %v68_v45, %v33_v26 }
  0x89   :  { %v86_v27 = vpop.permute.xlu1 %85  ;;  %v115_v57 = vadd.f32 %v108_v52, %v69_v48 }
  0x8a   :  { %v38_v28 = vpop.permute.xlu0 %37  ;;  %v110_v56 = vmul.f32 %v107_v47, %v86_v27 }
  0x8b   :  { %v70_v49 = vmul.f32 %v68_v45, %v38_v28 }
  0x8d   :  { %v90_v29 = vpop.permute.xlu1 %89  ;;  %v116_v59 = vadd.f32 %v109_v54, %v70_v49 }
  0x8e   :  { %v43_v30 = vpop.permute.xlu0 %42  ;;  %v111_v58 = vmul.f32 %v107_v47, %v90_v29 }
  0x8f   :  { %v71_v53 = vmul.f32 %v68_v45, %v43_v30 }
  0x91   :  { %v117_v61 = vadd.f32 %v110_v56, %v71_v53 }
  0x92   :  { %v48_v31 = vpop.permute.xlu0 %47  ;;  %v137_v32 = vpop.permute.xlu1 %136 }
  0x93   :  { %v72_v55 = vmul.f32 %v68_v45, %v48_v31  ;;  %v165_v63 = vadd.f32 %v137_v32, %v116_v59 }
  0x95   :  { %v118_v0 = vadd.f32 %v111_v58, %v72_v55  ;;  %v172_v10 = vmax.f32 %v165_v63, 0.0 }
  0x96   :  { %v132_v33 = vpop.permute.xlu0 %131 }
  0x97   :  { %v94_v34 = vpop.permute.xlu1 %93  ;;  %v164_v60 = vadd.f32 %v132_v33, %v115_v57 }
  0x98   :  { %v112_v7 = vmul.f32 %v107_v47, %v94_v34 }
  0x99   :  { %v171_v6 = vmax.f32 %v164_v60, 0.0 }
  0x9a   :  { %v53_v36 = vpop.permute.xlu0 %52 }
  0x9b   :  { %v73_v2 = vmul.f32 %v68_v45, %v53_v36 }
  0x9c   :  { %v58_v37 = vpop.permute.xlu1 %57 }
  0x9d   :  { %v74_v4 = vmul.f32 %v68_v45, %v58_v37  ;;  %v119_v14 = vadd.f32 %v112_v7, %v73_v2 }
  0x9e   :  { %v142_v39 = vpop.permute.xlu0 %141 }
  0x9f   :  { %v166_v3 = vadd.f32 %v142_v39, %v117_v61  ;;  %v120_v17 = vadd.f32 %v113_v9, %v74_v4 }
  0xa0   :  { %v147_v41 = vpop.permute.xlu1 %146 }
  0xa1   :  { %v167_v5 = vadd.f32 %v147_v41, %v118_v0  ;;  %v173_v12 = vmax.f32 %v166_v3, 0.0 }
  0xa2   :  { %v193_v44 = vpop.permute.xlu0 %192 }
  0xa3   :  { %v174_v16 = vmax.f32 %v167_v5, 0.0  ;;  %v221_v19 = vmul.f32 %v193_v44, %v172_v10 }
  0xa4   :  { %v188_v46 = vpop.permute.xlu1 %187 }
  0xa5   :  { %v220_v13 = vmul.f32 %v188_v46, %v171_v6 }
  0xa6   :  { %v152_v50 = vpop.permute.xlu0 %151 }
  0xa7   :  { %v168_v20 = vadd.f32 %v152_v50, %v119_v14  ;;  %v227_v25 = vadd.f32 %v221_v19, %v220_v13 }
  0xa8   :  { %v63_v51 = vpop.permute.xlu1 %62 }
  0xa9   :  { %v75_v15 = vmul.f32 %v68_v45, %v63_v51  ;;  %v175_v28 = vmax.f32 %v168_v20, 0.0 }
  0xaa   :  { %v157_v1 = vpop.permute.xlu0 %156 }
  0xab   :  { %v169_v26 = vadd.f32 %v157_v1, %v120_v17 }
  0xad   :  { %v102_v62 = vpop.permute.xlu1 %101  ;;  %v176_v32 = vmax.f32 %v169_v26, 0.0 }
  0xae   :  { %v114_v8 = vmul.f32 %v107_v47, %v102_v62  ;;  %v162_v18 = vpop.permute.xlu0 %161  ;;  %v240_v47 = vstv %s421_s4 }
  0xb0   :  { %v121_v21 = vadd.f32 %v114_v8, %v75_v15 }
  0xb2   :  { %v198_v11 = vpop.permute.xlu1 %197  ;;  %v170_v29 = vadd.f32 %v162_v18, %v121_v21  ;;  %v213_v30 = vpop.permute.xlu0 %212 }
  0xb3   :  { %v222_v22 = vmul.f32 %v198_v11, %v173_v12  ;;  %v225_v36 = vmul.f32 %v213_v30, %v176_v32 }
  0xb4   :  { %v177_v35 = vmax.f32 %v170_v29, 0.0 }
  0xb5   :  { %v228_v24 = vadd.f32 %v227_v25, %v222_v22 }
  0xb6   :  { %v203_v23 = vpop.permute.xlu1 %202 }
  0xb7   :  { %v223_v27 = vmul.f32 %v203_v23, %v174_v16 }
  0xb9   :  { %v229_v33 = vadd.f32 %v228_v24, %v223_v27 }
  0xba   :  { %v208_v31 = vpop.permute.xlu1 %207 }
  0xbb   :  { %v224_v34 = vmul.f32 %v208_v31, %v175_v28 }
  0xbd   :  { %v230_v37 = vadd.f32 %v229_v33, %v224_v34 }
  0xbe   :  { %v218_v38 = vpop.permute.xlu1 %217 }
  0xbf   :  { %v226_v39 = vmul.f32 %v218_v38, %v177_v35  ;;  %v231_v40 = vadd.f32 %v230_v37, %v225_v36 }
  0xc1   :  { %v232_v41 = vadd.f32 %v231_v40, %v226_v39 }
  0xc3   :  { %v233_v42 = vrot.slane %v232_v41, 4 }
  0xc5   :  { %v234_v43 = vadd.f32 %v233_v42, %v232_v41 }
  0xc7   :  { %v235_v44 = vrot.slane %v234_v43, 2 }
  0xc9   :  { %v236_v45 = vadd.f32 %v235_v44, %v234_v43 }
  0xcb   :  { %v237_v46 = vrot.slane %v236_v45, 1 }
  0xcd   :  { %v238_v48 = vadd.f32 %v237_v46, %v236_v45 }
  0xcf   :  { %v241_v49 = vadd.f32 %v240_v47, %v238_v48 }
  0xd1   :  { %v263_v50 = vmul.f32 -1.442695, %v241_v49 }
  0xd3   :  { %275 = vpow2.f32 %v263_v50 }
  0xdd   :  { %v276_v51 = vpop.eup %275 }
  0xde   :  { %v245_v52 = vadd.f32 1.0, %v276_v51 }
  0xe0   :  { %277 = vrcp.f32 %v245_v52 }
  0xea   :  { %v278_v53 = vpop.eup %277 }
  0xeb   :  { %248 = vst [vmem:[#allocation3] sm:$0x1] %v278_v53 }
  0xec   :  { %290 = shalt.err (!%p287_p4)
}
  0xed   :  { %s291_s15 = scalar_lea.hbm %s422_s5, 16 }
  0xee   :  { %p292_p5 = scmp.ne.s32.totalorder %s422_s5, %s291_s15  ;;  %p295_p6 = scmp.lt.u32.totalorder %s291_s15, %s422_s5 }
  0xf0   :  { %p297_p7 = pnand %p295_p6, %p292_p5 }
  0xf2   :  { %300 = shalt.err (!%p297_p7)
}
  0xf3   :  { %258 = dma.vmem_to_hbm [thread:$0]  %s256_s11, 16, %s422_s5, [#allocation4]  }
  0xf4   :  { %301 = dma.done.wait [#allocation4], 16  }
  0xf5   :  { %302 = vsyncadd [#allocation4], 4294967280 }
  0xf6   :  { %262 = vsyncpa [#allocation4], 1 }

</bundles_post_ra>
